<compile_context>
chip_gen: v5e
topology: v5e:2x2
jax: 0.10.0
libtpu: 0.0.40
codegen_flags: <defaults>
</compile_context>

<pallas_src>
import jax
import jax.numpy as jnp
from jax.experimental import pallas as pl
from jax.experimental.pallas import tpu as pltpu


# ----------------------------------------------------------------------------
# helpers
# ----------------------------------------------------------------------------

def _pad(n, m):
    return ((n + m - 1) // m) * m


def _resolve_block_budget(max_block_bytes):
    """Per-generation block-byte budget.  Explicit value wins; otherwise use
    ~VMEM/16 capped at 8 MiB (v5e/v6e: 8 MiB, v7x: 4 MiB)."""
    if max_block_bytes is not None:
        return int(max_block_bytes)
    cap = 8 << 20
    try:
        info = pltpu.get_tpu_info()
        vmem = getattr(info, "vmem_capacity_bytes", None) or getattr(
            info, "vmem_bytes", None)
        if vmem:
            cap = min(cap, max(1 << 20, int(vmem) // 16))
    except Exception:
        pass
    return cap


def _vmem_limit_bytes(single_buffer_bytes):
    """Scoped-VMEM request: double-buffered blocks + headroom, capped well
    under every generation's physical VMEM (v7x: 64 MiB)."""
    return int(min(48 << 20, max(16 << 20, 2 * single_buffer_bytes + (4 << 20))))


def _choose_t_tile_flat(T, D, b_blk, itemsize, max_block_bytes):
    """Largest divisor t of T such that the flattened (b_blk, t*D) block is
    legal (t*D % 128 == 0 or t == T) and fits the byte budget (incl. the two
    resident (1, t*D) f32 rows).  Guarded fallback: SMALLEST legal divisor."""
    legal = [t for t in range(1, T + 1)
             if T % t == 0 and ((t * D) % 128 == 0 or t == T)]
    fitting = [t for t in legal
               if (b_blk * itemsize + 8) * t * D <= max_block_bytes]
    if fitting:
        return max(fitting)
    return min(legal)


def _choose_t_tile_3d(T, D, b_blk, itemsize, max_block_bytes):
    """Largest divisor t of T (multiple of 8, or == T) whose per-step VMEM
    footprint (output block + lane-padded x block) fits the budget.
    Guarded fallback: the minimal-footprint legal divisor."""
    d_pad = _pad(D, 128)
    legal = [t for t in range(1, T + 1)
             if T % t == 0 and (t % 8 == 0 or t == T)]

    def cost(t):
        tp = _pad(t, 8)
        return b_blk * tp * d_pad * itemsize + b_blk * tp * 128 * 4

    fitting = [t for t in legal if cost(t) <= max_block_bytes]
    if fitting:
        return max(fitting)
    return min(legal, key=cost)


# ----------------------------------------------------------------------------
# kernels
# ----------------------------------------------------------------------------

def _make_dim1_kernel(t_tile):
    def kernel(freq_tile_ref, base_tile_ref, out_ref):
        # freq_tile_ref / base_tile_ref: (1, t_tile*D) f32, resident in VMEM.
        #   base = t_local * freq + 2*3.14*sigmoid(phase), flattened row-major.
        # out_ref: (b_blk, t_tile*D) lane-dense flattened output block.
        t_off = (pl.program_id(1) * t_tile).astype(jnp.float32)
        row = base_tile_ref[...] + t_off * freq_tile_ref[...]      # (1, f_blk)
        out_ref[...] = jnp.broadcast_to(row, out_ref.shape).astype(out_ref.dtype)
    return kernel


def _make_gather_kernel(t_tile, input_dim, d, b_blk, use_mxu):
    def kernel(x_ref, freq_ref, phase_ref, out_ref):
        # x_ref: (b_blk, t_tile, 1) int32 indices for this tile.
        # freq_ref / phase_ref: (input_dim, D) f32 tables (phase pre-sigmoided
        # and scaled by 2*3.14).
        # out_ref: (b_blk, t_tile, D).
        t_off = (pl.program_id(1) * t_tile).astype(jnp.float32)
        pos = (jax.lax.broadcasted_iota(jnp.int32, (b_blk, t_tile, d), 1)
               .astype(jnp.float32) + t_off)
        x = x_ref[...]                                             # (b_blk,t,1)

        if use_mxu:
            # One-hot gather on the MXU: VPU only does the compare and the
            # final mul+add.  Out-of-range indices produce zero rows.
            ids = jax.lax.broadcasted_iota(
                jnp.int32, (b_blk, t_tile, input_dim), 2)
            onehot = (x == ids).astype(jnp.float32)                # (b,t,id)
            oh2 = onehot.reshape(b_blk * t_tile, input_dim)
            freq_sel = jnp.dot(oh2, freq_ref[...],
                               preferred_element_type=jnp.float32)
            phase_sel = jnp.dot(oh2, phase_ref[...],
                                preferred_element_type=jnp.float32)
            freq_sel = freq_sel.reshape(b_blk, t_tile, d)
            phase_sel = phase_sel.reshape(b_blk, t_tile, d)
        else:
            # Shared-mask select chain: row 0 unconditionally, then one
            # compare + two selects per extra row (3*(id-1)+2 VPU ops/elem).
            # Out-of-range indices take table row 0.
            freq_sel = freq_ref[0:1, :][None]                      # (1,1,D)
            phase_sel = phase_ref[0:1, :][None]
            for i in range(1, input_dim):
                mask = x == i                                      # (b,t,1)
                freq_sel = jnp.where(mask, freq_ref[i:i + 1, :][None], freq_sel)
                phase_sel = jnp.where(mask, phase_ref[i:i + 1, :][None], phase_sel)

        out_ref[...] = (pos * freq_sel + phase_sel).astype(out_ref.dtype)
    return kernel


# ----------------------------------------------------------------------------
# wrappers
# ----------------------------------------------------------------------------

def _forward_dim1(B, T, D, freq_row, phase_row, out_dtype, max_block_bytes):
    flat = T * D
    itemsize = jnp.dtype(out_dtype).itemsize

    # Batch block: 8 sublane-aligned rows with a cdiv grid (full B when B<=8).
    b_blk = B if B <= 8 else 8
    t_tile = _choose_t_tile_flat(T, D, b_blk, itemsize, max_block_bytes)
    f_blk = t_tile * D

    # If full rows fit the budget, grow the batch block in multiples of 8
    # (bigger DMAs, fewer ~0.35us grid steps).
    if f_blk == flat and B > 8:
        while (b_blk + 8 <= B
               and (b_blk + 8) * flat * itemsize <= max_block_bytes):
            b_blk += 8

    grid_b = pl.cdiv(B, b_blk)
    grid_f = flat // f_blk

    # v7x megacore: split a single large block in two so both TCs get work.
    if grid_b * grid_f == 1 and b_blk * f_blk * itemsize >= (512 << 10):
        half = t_tile // 2
        if half >= 1 and T % half == 0 and (half * D) % 128 == 0:
            t_tile, f_blk = half, half * D
            grid_f = flat // f_blk

    # Tile-local constants (one block row each, tiny vs. the output): the
    # kernel only adds the per-tile position offset and broadcasts over B.
    pos_local = jnp.arange(t_tile, dtype=jnp.float32)[:, None]     # (t_tile,1)
    base_tile = (pos_local * freq_row + phase_row).reshape(1, f_blk)
    freq_tile = jnp.tile(freq_row, (t_tile, 1)).reshape(1, f_blk)

    out_buf = _pad(b_blk, 8) * _pad(f_blk, 128) * itemsize
    in_buf = 2 * 8 * _pad(f_blk, 128) * 4
    vmem_limit = _vmem_limit_bytes(out_buf + in_buf)

    out = pl.pallas_call(
        _make_dim1_kernel(t_tile),
        out_shape=jax.ShapeDtypeStruct((B, flat), out_dtype),
        grid=(grid_b, grid_f),
        in_specs=[
            pl.BlockSpec((1, f_blk), lambda b, f: (0, 0)),   # resident in VMEM
            pl.BlockSpec((1, f_blk), lambda b, f: (0, 0)),   # resident in VMEM
        ],
        out_specs=pl.BlockSpec((b_blk, f_blk), lambda b, f: (b, f)),
        compiler_params=pltpu.CompilerParams(
            dimension_semantics=("parallel", "parallel"),
            vmem_limit_bytes=vmem_limit),
        cost_estimate=pl.CostEstimate(
            flops=int(2 * B * flat),
            transcendentals=0,
            bytes_accessed=int(B * flat * itemsize + 2 * f_blk * 4)),
    )(freq_tile, base_tile)
    return out.reshape(B, T, D)


def _forward_gather(x, freq_table, phase_term, out_dtype, max_block_bytes,
                    mxu_threshold):
    B, T = x.shape
    input_dim, D = freq_table.shape
    itemsize = jnp.dtype(out_dtype).itemsize
    d_pad = _pad(D, 128)

    b_blk = B if B <= 8 else 8
    t_tile = _choose_t_tile_3d(T, D, b_blk, itemsize, max_block_bytes)

    grid_b = pl.cdiv(B, b_blk)
    grid_t = T // t_tile
    # v7x megacore: split a single large block in two so both TCs get work.
    if grid_b * grid_t == 1:
        block_bytes = b_blk * _pad(t_tile, 8) * d_pad * itemsize
        half = t_tile // 2
        if block_bytes >= (512 << 10) and half >= 8 and T % half == 0 \
                and half % 8 == 0:
            t_tile, grid_t = half, T // half

    use_mxu = input_dim >= mxu_threshold
    x3 = x.astype(jnp.int32)[:, :, None]                           # (B, T, 1)

    out_buf = b_blk * _pad(t_tile, 8) * d_pad * itemsize
    x_buf = b_blk * _pad(t_tile, 8) * 128 * 4
    table_buf = _pad(input_dim, 8) * d_pad * 4
    vmem_limit = _vmem_limit_bytes(out_buf + x_buf + 2 * table_buf)

    per_elem_ops = (2 + 4 * input_dim) if use_mxu else (2 + 3 * (input_dim - 1))
    return pl.pallas_call(
        _make_gather_kernel(t_tile, input_dim, D, b_blk, use_mxu),
        out_shape=jax.ShapeDtypeStruct((B, T, D), out_dtype),
        grid=(grid_b, grid_t),
        in_specs=[
            pl.BlockSpec((b_blk, t_tile, 1), lambda b, t: (b, t, 0)),
            pl.BlockSpec((input_dim, D), lambda b, t: (0, 0)),     # resident
            pl.BlockSpec((input_dim, D), lambda b, t: (0, 0)),     # resident
        ],
        out_specs=pl.BlockSpec((b_blk, t_tile, D), lambda b, t: (b, t, 0)),
        compiler_params=pltpu.CompilerParams(
            dimension_semantics=("parallel", "parallel"),
            vmem_limit_bytes=vmem_limit),
        cost_estimate=pl.CostEstimate(
            flops=int(per_elem_ops * B * T * D),
            transcendentals=0,
            bytes_accessed=int(B * T * D * itemsize + B * T * 4
                               + 2 * input_dim * D * 4)),
    )(x3, freq_table, phase_term)


def position_embedding(x, freq_table, phase_table, *, input_dim=1,
                       zero_phase=False, out_dtype=jnp.float32,
                       max_block_bytes=None, mxu_threshold=4):
    """Forward of PositionEmbedding.

    x: (B, T) integer indices; freq_table/phase_table: (input_dim, D).
    out_dtype=jnp.bfloat16 is the fast path when downstream accepts it (both
    kernels are HBM-writeback bound).  mxu_threshold: one-hot MXU gather kicks
    in at this input_dim (4 is right for v6e/v7x; use 6 on v5e).
    """
    B, T = x.shape
    D = freq_table.shape[1]

    if zero_phase:
        # PyTorch returns zeros_like(pos_embed); skip the kernel entirely.
        return jnp.zeros((B, T, D), out_dtype)

    budget = _resolve_block_budget(max_block_bytes)

    # Hoist sigmoid to table granularity: only input_dim * D distinct values.
    # Module uses the literal constant 2 * 3.14 (not 2*pi) -- kept exactly.
    phase_term = (2.0 * 3.14) * jax.nn.sigmoid(phase_table.astype(jnp.float32))
    freq_table = freq_table.astype(jnp.float32)

    if input_dim == 1:
        # PyTorch zeroes x, so the result is independent of x: skip the x DMA
        # and the gather entirely; lane-dense flattened broadcast-store path.
        return _forward_dim1(B, T, D, freq_table[0:1, :], phase_term[0:1, :],
                             out_dtype, budget)
    return _forward_gather(x, freq_table, phase_term, out_dtype, budget,
                           mxu_threshold)


# ----------------------------------------------------------------------------
# pure-JAX reference (mirrors the PyTorch forward exactly)
# ----------------------------------------------------------------------------

def _reference(x, freq_table, phase_table, *, input_dim=1, zero_phase=False):
    B, T = x.shape
    if input_dim == 1:
        x = jnp.zeros_like(x)
    phases = 2.0 * 3.14 * jax.nn.sigmoid(phase_table[x])           # (B, T, D)
    positions = jnp.arange(T, dtype=jnp.float32)[:, None]          # (T, 1)
    pos_embed = positions * freq_table[x] + phases                 # (B, T, D)
    if zero_phase:
        pos_embed = jnp.zeros_like(pos_embed)
    return pos_embed


def _make_tables(key, input_dim, D):
    freq_inits = 1.0 / jnp.power(10000.0, jnp.arange(D, dtype=jnp.float32) / D)
    freq_table = jnp.tile(freq_inits[None, :], (input_dim, 1))      # (id, D)
    phase_table = jax.random.uniform(key, (input_dim, D), jnp.float32)
    return freq_table, phase_table


if __name__ == "__main__":
    root = jax.random.PRNGKey(0)
    k1, k2, k3, k4, k5 = jax.random.split(root, 5)

    # ---- case 1: module defaults (input_dim=1), small shapes ----------------
    B, T, D = 2, 8, 32
    ft, pt = _make_tables(k1, 1, D)
    x = jax.random.randint(k2, (B, T), 0, 1, dtype=jnp.int32)
    out = jax.block_until_ready(position_embedding(x, ft, pt, input_dim=1))
    ref = _reference(x, ft, pt, input_dim=1)
    assert out.shape == (B, T, D)
    assert jnp.allclose(out, ref, atol=1e-4, rtol=1e-5), "case 1 mismatch"

    # ---- case 2: input_dim=1, B>8 not multiple of 8 (cdiv batch grid) -------
    B2, T2, D2 = 10, 512, 128
    ft2, pt2 = _make_tables(k3, 1, D2)
    x2 = jnp.zeros((B2, T2), jnp.int32)
    out2 = jax.block_until_ready(
        position_embedding(x2, ft2, pt2, input_dim=1,
                           max_block_bytes=128 * 1024))
    ref2 = _reference(x2, ft2, pt2, input_dim=1)
    assert jnp.allclose(out2, ref2, atol=1e-3, rtol=1e-5), "case 2 mismatch"

    # ---- case 3: input_dim=3 -> shared-mask select gather, tiled grid -------
    B3, T3, D3, ID3 = 2, 128, 32, 3
    ft3, pt3 = _make_tables(k4, ID3, D3)
    x3 = jax.random.randint(k2, (B3, T3), 0, ID3, dtype=jnp.int32)
    out3 = jax.block_until_ready(
        position_embedding(x3, ft3, pt3, input_dim=ID3,
                           max_block_bytes=64 * 1024))
    ref3 = _reference(x3, ft3, pt3, input_dim=ID3)
    assert jnp.allclose(out3, ref3, atol=1e-4, rtol=1e-5), "case 3 mismatch"

    # ---- case 4: input_dim=5 -> one-hot MXU gather path ---------------------
    B4, T4, D4, ID4 = 2, 64, 128, 5
    ft4, pt4 = _make_tables(k5, ID4, D4)
    x4 = jax.random.randint(k3, (B4, T4), 0, ID4, dtype=jnp.int32)
    out4 = jax.block_until_ready(position_embedding(x4, ft4, pt4, input_dim=ID4))
    ref4 = _reference(x4, ft4, pt4, input_dim=ID4)
    assert jnp.allclose(out4, ref4, atol=1e-4, rtol=1e-5), "case 4 mismatch"

    # ---- case 5: bfloat16 fast path + zero_phase short-circuit --------------
    out5 = jax.block_until_ready(
        position_embedding(x3, ft3, pt3, input_dim=ID3, out_dtype=jnp.bfloat16))
    assert jnp.allclose(out5.astype(jnp.float32), ref3,
                        atol=1e-2, rtol=2e-2), "case 5 mismatch"
    out6 = jax.block_until_ready(
        position_embedding(x, ft, pt, input_dim=1, zero_phase=True))
    assert jnp.allclose(out6, jnp.zeros_like(out6)), "case 6 mismatch"

    print("KERNEL_OK")
</pallas_src>

<mosaic_0001>
module attributes {stable_mosaic.version = 11 : i64} {
  func.func @kernel(%arg0: i32, %arg1: i32, %arg2: memref<1x256xf32, #tpu.memory_space<vmem>>, %arg3: memref<1x256xf32, #tpu.memory_space<vmem>>, %arg4: memref<2x256xf32, #tpu.memory_space<vmem>>) attributes {dimension_semantics = [#tpu.dimension_semantics<parallel>, #tpu.dimension_semantics<parallel>], iteration_bounds = array<i64: 1, 1>, scalar_prefetch = 0 : i64, scratch_operands = 0 : i64, tpu.core_type = #tpu.core_type<tc>, window_params = [{pipeline_mode = #tpu.pipeline_mode<synchronous>, transform_indices = @transform_0, window_bounds = array<i64: 1, 256>}, {pipeline_mode = #tpu.pipeline_mode<synchronous>, transform_indices = @transform_1, window_bounds = array<i64: 1, 256>}, {transform_indices = @transform_2, window_bounds = array<i64: 2, 256>}]} {
    %c8_i32 = arith.constant 8 : i32
    %0 = arith.muli %arg1, %c8_i32 : i32
    %1 = arith.sitofp %0 : i32 to f32
    %c0 = arith.constant 0 : index
    %c0_0 = arith.constant 0 : index
    %2 = vector.load %arg3[%c0, %c0_0] : memref<1x256xf32, #tpu.memory_space<vmem>>, vector<1x256xf32>
    %c0_1 = arith.constant 0 : index
    %c0_2 = arith.constant 0 : index
    %3 = vector.load %arg2[%c0_1, %c0_2] : memref<1x256xf32, #tpu.memory_space<vmem>>, vector<1x256xf32>
    %4 = vector.broadcast %1 : f32 to vector<1x256xf32>
    %5 = arith.mulf %4, %3 : vector<1x256xf32>
    %6 = arith.addf %2, %5 : vector<1x256xf32>
    %7 = vector.shape_cast %6 : vector<1x256xf32> to vector<1x256xf32>
    %8 = vector.broadcast %7 : vector<1x256xf32> to vector<2x256xf32>
    %c0_3 = arith.constant 0 : index
    %c0_4 = arith.constant 0 : index
    %9 = vector.load %arg4[%c0_3, %c0_4] : memref<2x256xf32, #tpu.memory_space<vmem>>, vector<2x256xf32>
    tpu.vector_store %arg4[%c0_3, %c0_4], %8 {strides = array<i32>} : memref<2x256xf32, #tpu.memory_space<vmem>>, vector<2x256xf32>,
    return
  }
  func.func @transform_0(%arg0: i32, %arg1: i32) -> (i32, i32) {
    %c0_i32 = arith.constant 0 : i32
    %c0_i32_0 = arith.constant 0 : i32
    %c0_i32_1 = arith.constant 0 : i32
    return %c0_i32, %c0_i32_0 : i32, i32
  }
  func.func @transform_1(%arg0: i32, %arg1: i32) -> (i32, i32) {
    %c0_i32 = arith.constant 0 : i32
    %c0_i32_0 = arith.constant 0 : i32
    %c0_i32_1 = arith.constant 0 : i32
    return %c0_i32, %c0_i32_0 : i32, i32
  }
  func.func @transform_2(%arg0: i32, %arg1: i32) -> (i32, i32) {
    %c0_i32 = arith.constant 0 : i32
    return %arg0, %arg1 : i32, i32
  }
}

</mosaic_0001>

<bundles_post_ra>
// kernel: tpu_custom_call.1
= control target key start
LH: loop header
LB: loop body
LE: loop exit
PB: predicated region body
PF: predicated region fallthrough
CT: control target
= control target key end

     0   :  { %7 = vsyncpa [#allocation3], 0  ;;  %s181_s0 = inlined_call_operand.hbm [shape: f32[1,256], index: 0, kind: input, shape index: {}]   ;;  %s182_s1 = inlined_call_operand.hbm [shape: f32[1,256], index: 1, kind: input, shape index: {}]   ;;  %s183_s2 = inlined_call_operand.hbm [shape: f32[2,256], index: 2, kind: output, shape index: {}]  }
   0x1   :  { %8 = vsyncpa [#allocation6], 0 }
   0x2   :  { %9 = vsyncpa [#allocation4], 0  ;;  %s15_s11 = sshll.u32 %s181_s0, 4  ;;  %s154_s12 = smov [#allocation2]   ;;  %s16_s11 = int_to_ptr.hbm [resolvable:$true] %s15_s11 }
   0x3   :  { %s17_s13 = sshll.u32 %s154_s12, 4  ;;  %s26_s16 = sshll.u32 %s182_s1, 4  ;;  %s18_s13 = int_to_ptr.vmem [resolvable:$true] %s17_s13  ;;  %s27_s16 = int_to_ptr.hbm [resolvable:$true] %s26_s16 }
   0x4   :  { %20 = dma.hbm_to_vmem [thread:$0]  %s16_s11, 32, %s18_s13, [#allocation3]  }
   0x5   :  { %s155_s17 = smov [#allocation5]  }
   0x6   :  { %s28_s18 = sshll.u32 %s155_s17, 4  ;;  %s29_s18 = int_to_ptr.vmem [resolvable:$true] %s28_s18 }
   0x7   :  { %31 = dma.hbm_to_vmem [thread:$0]  %s27_s16, 32, %s29_s18, [#allocation6]  }
   0x8   :  { %148 = dma.done.wait [#allocation3], 32  }
   0x9   :  { %149 = vsyncadd [#allocation3], 4294967264 }
   0xa   :  { %150 = dma.done.wait [#allocation6], 32  }
   0xb   :  { %151 = vsyncadd [#allocation6], 4294967264  ;;  %v42_v0 = vld [vmem:[#allocation5] sm:$0x3]  ;;  %v43_v1 = vld [vmem:[#allocation2] sm:$0x3] }
   0xc   :  { %v45_v2 = vmul.f32 0.0, %v43_v1  ;;  %s156_s0 = smov [#allocation7]   ;;  %s62_s21 = sshll.u32 %s183_s2, 4  ;;  %vm51_vm0 = vcmask 1041408   ;;  %s63_s21 = int_to_ptr.hbm [resolvable:$true] %s62_s21 }
   0xd   :  { %s60_s19 = sshll.u32 %s156_s0, 4  ;;  %s61_s19 = int_to_ptr.vmem [resolvable:$true] %s60_s19 }
   0xe   :  { %v46_v3 = vadd.f32 %v45_v2, %v42_v0 }
  0x10   :  { %v48_v4 = vperm.slane %v46_v3, 0  ;;  %v49_v5 = vperm.slane %v46_v3, 1 }
  0x12   :  { %v50_v6 = vrot.slane %v49_v5, 6 }
  0x14   :  { %v52_v7 = vsel %vm51_vm0, %v48_v4, %v50_v6 }
  0x15   :  { %54 = vst [vmem:[#allocation7] sm:$0xf] %v52_v7 }
  0x16   :  { %65 = dma.vmem_to_hbm [thread:$0]  %s61_s19, 64, %s63_s21, [#allocation4]  }
  0x17   :  { %152 = dma.done.wait [#allocation4], 64  }
  0x18   :  { %153 = vsyncadd [#allocation4], 4294967232 }
  0x19   :  { %70 = vsyncpa [#allocation3], 1 }
  0x1a   :  { %71 = vsyncpa [#allocation6], 1 }
  0x1b   :  { %72 = vsyncpa [#allocation4], 1 }

</bundles_post_ra>
